<compile_context>
chip_gen: v7x
topology: tpu7x:2x2x1
jax: 0.10.0
libtpu: 0.0.40
codegen_flags: <defaults>
</compile_context>

<pallas_src>
import functools

import jax
import jax.numpy as jnp
from jax.experimental import pallas as pl
from jax.experimental.pallas import tpu as pltpu

EPS = 1e-5  # torch.nn.LayerNorm default


# ---------------------------------------------------------------------------
# In-kernel helpers (traced inside the Pallas kernels) — all f32 math
# ---------------------------------------------------------------------------
def _layernorm(x, gamma, beta):
    mu = jnp.mean(x, axis=-1, keepdims=True)
    var = jnp.mean((x - mu) ** 2, axis=-1, keepdims=True)
    return (x - mu) * jax.lax.rsqrt(var + EPS) * gamma + beta


def _erf(x):
    # Abramowitz & Stegun 7.1.26 polynomial, max abs error 1.5e-7.
    # Uses only abs/exp/mul/add/div -> guaranteed Mosaic lowering on all gens.
    a1, a2, a3, a4, a5 = 0.254829592, -0.284496736, 1.421413741, -1.453152027, 1.061405429
    p = 0.3275911
    ax = jnp.abs(x)
    t = 1.0 / (1.0 + p * ax)
    poly = ((((a5 * t + a4) * t + a3) * t + a2) * t + a1) * t
    y = 1.0 - poly * jnp.exp(-ax * ax)
    return jnp.where(x >= 0.0, y, -y)


def _gelu_exact(x):
    # exact (erf-based) GELU, matching torch.nn.GELU() default
    return 0.5 * x * (1.0 + _erf(x * jnp.float32(0.7071067811865476)))


# ---------------------------------------------------------------------------
# Kernel 1: patch embedding + cls token + positional embedding
#   patches_ext already has a zero row 0 (cls slot) and zero pad rows, so the
#   GEMM output only needs one vectorized add with `init` (cls+pos / pos+bias)
#   — no sub-sublane slice stores.  grid=(B,), "parallel".
# ---------------------------------------------------------------------------
def _embed_kernel(patches_ref, wpatch_ref, init_ref, o_ref):
    emb = jnp.dot(patches_ref[0], wpatch_ref[...],
                  preferred_element_type=jnp.float32)          # (n1p, dim) f32
    o_ref[0] = emb + init_ref[...]


def patch_embed(patches_ext, wpatch_t, init):
    B, n1p, patch_dim = patches_ext.shape
    dim = wpatch_t.shape[1]
    return pl.pallas_call(
        _embed_kernel,
        grid=(B,),
        in_specs=[
            pl.BlockSpec((1, n1p, patch_dim), lambda b: (b, 0, 0)),
            pl.BlockSpec((patch_dim, dim), lambda b: (0, 0)),
            pl.BlockSpec((n1p, dim), lambda b: (0, 0)),
        ],
        out_specs=pl.BlockSpec((1, n1p, dim), lambda b: (b, 0, 0)),
        out_shape=jax.ShapeDtypeStruct((B, n1p, dim), jnp.float32),
        compiler_params=pltpu.CompilerParams(
            dimension_semantics=("parallel",)),
    )(patches_ext, wpatch_t, init)


# ---------------------------------------------------------------------------
# Kernel 2: fused transformer (all layers)
#
#   grid = (B, depth), dimension_semantics = ("parallel", "arbitrary").
#   The output block (1, n1p, dim) has a constant index over the depth axis,
#   so it stays resident in VMEM and serves as the activation carry.
#   Per-layer weights are stacked with a leading depth axis and streamed
#   (double-buffered) by BlockSpec.
# ---------------------------------------------------------------------------
def _transformer_kernel(x0_ref, vec_ref, b1_ref, wqkv_ref, wo_ref, w1_ref,
                        w2_ref, o_ref, *, n_real, heads, dim_head):
    bf16 = jnp.bfloat16
    d = pl.program_id(1)
    n1p = o_ref.shape[1]
    inner = heads * dim_head

    # ---- depth step 0: seed the resident carry with the embedded tokens ----
    @pl.when(d == 0)
    def _init():
        o_ref[...] = x0_ref[...]

    x = o_ref[0]                         # (n1p, dim) f32 — VMEM-resident carry
    vecs = vec_ref[0]                    # (6, dim): ln1_g ln1_b ln2_g ln2_b bo b2

    # ---- PreNorm + Multi-Head Attention + residual --------------------------
    xn = _layernorm(x, vecs[0:1, :], vecs[1:2, :])
    qkv = jnp.dot(xn.astype(bf16), wqkv_ref[0],
                  preferred_element_type=jnp.float32)          # (n1p, 3*inner)
    scale = jnp.float32(dim_head ** -0.5)
    # torch layout: qkv last dim = [q | k | v], each (heads, dim_head) row-major
    q = (qkv[:, 0 * inner:1 * inner] * scale).reshape(n1p, heads, dim_head)
    k = qkv[:, 1 * inner:2 * inner].reshape(n1p, heads, dim_head)
    v = qkv[:, 2 * inner:3 * inner].reshape(n1p, heads, dim_head)
    q3 = jnp.swapaxes(q, 0, 1).astype(bf16)                    # (heads, n1p, dh)
    k3 = jnp.swapaxes(k, 0, 1).astype(bf16)
    v3 = jnp.swapaxes(v, 0, 1).astype(bf16)

    # one batched contraction over all heads (flash-attn einsum pattern)
    dots = jnp.einsum('hqd,hkd->hqk', q3, k3,
                      preferred_element_type=jnp.float32)      # (heads, n1p, n1p)
    if n1p > n_real:                     # mask padded key columns
        kmask = jax.lax.broadcasted_iota(jnp.int32, (1, 1, n1p), 2) < n_real
        dots = jnp.where(kmask, dots, jnp.float32(-1e30))
    m = jnp.max(dots, axis=-1, keepdims=True)
    p = jnp.exp(dots - m)
    # approx reciprocal (EUP): ~2^-12 rel. error, fine for inference
    attn = p * pl.reciprocal(jnp.sum(p, axis=-1, keepdims=True), approx=True)
    o3 = jnp.einsum('hqk,hkd->hqd', attn.astype(bf16), v3,
                    preferred_element_type=jnp.float32)        # (heads, n1p, dh)
    attn_out = jnp.swapaxes(o3, 0, 1).reshape(n1p, inner)      # (n1p, inner)

    proj = jnp.dot(attn_out.astype(bf16), wo_ref[0],
                   preferred_element_type=jnp.float32) + vecs[4:5, :]
    x = x + proj                                               # residual

    # ---- PreNorm + FeedForward + residual -----------------------------------
    # TODO(synk): at realistic ViT sizes, M-tile this block (and the QKV GEMM)
    # with an inner pl.loop so qkv / h1 temporaries stay bounded on v7x VMEM.
    xn2 = _layernorm(x, vecs[2:3, :], vecs[3:4, :])
    h1 = jnp.dot(xn2.astype(bf16), w1_ref[0],
                 preferred_element_type=jnp.float32) + b1_ref[0]
    h1 = _gelu_exact(h1)
    y = jnp.dot(h1.astype(bf16), w2_ref[0],
                preferred_element_type=jnp.float32) + vecs[5:6, :]
    x = x + y                                                  # residual

    o_ref[0] = x                                               # carry to next layer


def transformer(x0, vecs_all, b1_all, wqkv_all, wo_all, w1_all, w2_all,
                *, n1, heads, dim_head):
    B, n1p, dim = x0.shape
    depth = wqkv_all.shape[0]
    inner = heads * dim_head
    mlp_dim = w1_all.shape[2]
    M = B * n1p
    G = B * heads

    # advisory cost estimate for the XLA scheduler
    gemm_flops = depth * (2 * M * dim * 3 * inner + 2 * M * inner * dim
                          + 2 * M * dim * mlp_dim + 2 * M * mlp_dim * dim)
    attn_flops = depth * 4 * G * n1p * n1p * dim_head
    transcendentals = depth * (G * n1p * n1p + M * mlp_dim)
    bytes_accessed = (2 * 4 * M * dim
                      + B * depth * 2 * (dim * 3 * inner + inner * dim
                                         + 2 * dim * mlp_dim)
                      + B * depth * 4 * (6 * dim + mlp_dim))
    cost = pl.CostEstimate(flops=int(gemm_flops + attn_flops),
                           transcendentals=int(transcendentals),
                           bytes_accessed=int(bytes_accessed))

    kernel = functools.partial(_transformer_kernel, n_real=n1, heads=heads,
                               dim_head=dim_head)
    return pl.pallas_call(
        kernel,
        grid=(B, depth),
        in_specs=[
            pl.BlockSpec((1, n1p, dim), lambda b, d: (b, 0, 0)),       # x0 (read @ d==0)
            pl.BlockSpec((1, 6, dim), lambda b, d: (d, 0, 0)),         # packed vectors
            pl.BlockSpec((1, 1, mlp_dim), lambda b, d: (d, 0, 0)),     # b1
            pl.BlockSpec((1, dim, 3 * inner), lambda b, d: (d, 0, 0)), # wqkv^T
            pl.BlockSpec((1, inner, dim), lambda b, d: (d, 0, 0)),     # wo^T
            pl.BlockSpec((1, dim, mlp_dim), lambda b, d: (d, 0, 0)),   # w1^T
            pl.BlockSpec((1, mlp_dim, dim), lambda b, d: (d, 0, 0)),   # w2^T
        ],
        out_specs=pl.BlockSpec((1, n1p, dim), lambda b, d: (b, 0, 0)),
        out_shape=jax.ShapeDtypeStruct((B, n1p, dim), jnp.float32),
        compiler_params=pltpu.CompilerParams(
            dimension_semantics=("parallel", "arbitrary")),
        cost_estimate=cost,
    )(x0, vecs_all, b1_all, wqkv_all, wo_all, w1_all, w2_all)


# ---------------------------------------------------------------------------
# Kernel 3: mlp_head = LayerNorm + Linear on the pooled token
#   (weights pre-padded to 128 lanes in prepare_operands -> lane-dense store)
# ---------------------------------------------------------------------------
def _head_kernel(x_ref, gb_ref, w_ref, b_ref, o_ref):
    xn = _layernorm(x_ref[...], gb_ref[0:1, :], gb_ref[1:2, :])
    o_ref[...] = (jnp.dot(xn.astype(jnp.bfloat16), w_ref[...],
                          preferred_element_type=jnp.float32) + b_ref[...])


def mlp_head(pooled, head_gb, head_w_t, head_b_p, num_classes):
    bsz = pooled.shape[0]
    n_pad = head_w_t.shape[1]
    out = pl.pallas_call(
        _head_kernel,
        out_shape=jax.ShapeDtypeStruct((bsz, n_pad), jnp.float32),
    )(pooled, head_gb, head_w_t, head_b_p)
    return out[:, :num_classes]


# ---------------------------------------------------------------------------
# Parameter init (deterministic, synthetic; torch layout conventions)
# ---------------------------------------------------------------------------
def init_vit_params(key, *, image_size, patch_size, channels, dim, depth,
                    heads, dim_head, mlp_dim, num_classes):
    num_patches = (image_size // patch_size) ** 2
    patch_dim = channels * patch_size * patch_size
    inner = heads * dim_head

    def nrm(k, shape, scale=0.02):
        return scale * jax.random.normal(k, shape, dtype=jnp.float32)

    keys = iter(jax.random.split(key, 4 + depth * 4))
    params = {
        "patch_w": nrm(next(keys), (dim, patch_dim)),
        "patch_b": jnp.zeros((dim,), jnp.float32),
        "pos_embedding": nrm(next(keys), (1, num_patches + 1, dim), 1.0),
        "cls_token": nrm(next(keys), (1, 1, dim), 1.0),
        "layers": [],
        "head_ln_g": jnp.ones((dim,), jnp.float32),
        "head_ln_b": jnp.zeros((dim,), jnp.float32),
        "head_w": nrm(next(keys), (num_classes, dim)),
        "head_b": jnp.zeros((num_classes,), jnp.float32),
    }
    for _ in range(depth):
        params["layers"].append({
            "ln1_g": jnp.ones((dim,), jnp.float32),
            "ln1_b": jnp.zeros((dim,), jnp.float32),
            "wqkv": nrm(next(keys), (3 * inner, dim)),
            "wo": nrm(next(keys), (dim, inner)),
            "bo": jnp.zeros((dim,), jnp.float32),
            "ln2_g": jnp.ones((dim,), jnp.float32),
            "ln2_b": jnp.zeros((dim,), jnp.float32),
            "w1": nrm(next(keys), (mlp_dim, dim)),
            "b1": jnp.zeros((mlp_dim,), jnp.float32),
            "w2": nrm(next(keys), (dim, mlp_dim)),
            "b2": jnp.zeros((dim,), jnp.float32),
        })
    return params


# ---------------------------------------------------------------------------
# One-time operand preparation (pre-transpose, pack, cast, pad) — paid once,
# not per forward call.
# ---------------------------------------------------------------------------
def prepare_operands(params, *, image_size, patch_size, channels, heads,
                     dim_head):
    bf16 = jnp.bfloat16
    dim = params["patch_w"].shape[0]
    n = (image_size // patch_size) ** 2
    n1 = n + 1
    n1p = ((n1 + 7) // 8) * 8                     # sublane-aligned sequence
    patch_dim = channels * patch_size * patch_size
    layers = params["layers"]

    pos = params["pos_embedding"][0, :n1]                          # (n1, dim)
    init = jnp.zeros((n1p, dim), jnp.float32)
    init = init.at[0].set(params["cls_token"][0, 0] + pos[0])      # cls + pos0
    init = init.at[1:n1].set(pos[1:] + params["patch_b"][None, :]) # pos + bias

    ops = {
        "n": n, "n1": n1, "n1p": n1p, "patch_dim": patch_dim, "dim": dim,
        "wpatch_t": params["patch_w"].T.astype(bf16),              # (pd, dim)
        "init": init,
        # per-layer (1, dim) vectors packed into one (depth, 6, dim) operand
        "vecs_all": jnp.stack(
            [jnp.stack([L["ln1_g"], L["ln1_b"], L["ln2_g"], L["ln2_b"],
                        L["bo"], L["b2"]], axis=0) for L in layers], axis=0),
        "b1_all": jnp.stack([L["b1"] for L in layers], axis=0)[:, None, :],
        "wqkv_all": jnp.stack([L["wqkv"].T for L in layers]).astype(bf16),
        "wo_all": jnp.stack([L["wo"].T for L in layers]).astype(bf16),
        "w1_all": jnp.stack([L["w1"].T for L in layers]).astype(bf16),
        "w2_all": jnp.stack([L["w2"].T for L in layers]).astype(bf16),
    }
    # mlp_head prep (hoisted out of the per-call path; padded to 128 lanes)
    ncls = params["head_w"].shape[0]
    n_pad = ((ncls + 127) // 128) * 128
    ops["num_classes"] = ncls
    ops["head_gb"] = jnp.stack([params["head_ln_g"], params["head_ln_b"]], axis=0)
    ops["head_w_t"] = jnp.zeros((dim, n_pad), bf16).at[:, :ncls].set(
        params["head_w"].T.astype(bf16))
    ops["head_b_p"] = jnp.zeros((1, n_pad), jnp.float32).at[:, :ncls].set(
        params["head_b"][None, :])
    return ops


# ---------------------------------------------------------------------------
# ViT forward (layout glue in plain JAX, all hot paths inside Pallas)
# ---------------------------------------------------------------------------
def vit_forward(ops, img, *, patch_size, heads, dim_head, pool="cls"):
    B, C, H, W = img.shape
    p = patch_size
    h, w = H // p, W // p
    n, n1, n1p = ops["n"], ops["n1"], ops["n1p"]
    patch_dim = ops["patch_dim"]

    # Rearrange 'b c (h p1) (w p2) -> b (h w) (p1 p2 c)'   (glue, no compute)
    x = img.reshape(B, C, h, p, w, p)
    x = jnp.transpose(x, (0, 2, 4, 3, 5, 1)).reshape(B, n, patch_dim)
    # zero row 0 (cls slot) + zero pad rows -> fully vectorized add in-kernel
    patches_ext = jnp.pad(x, ((0, 0), (1, n1p - n - 1), (0, 0))).astype(jnp.bfloat16)

    # Kernel 1: patch embedding + cls token + positional embedding
    x0 = patch_embed(patches_ext, ops["wpatch_t"], ops["init"])

    # Kernel 2: fused transformer (grid over batch x depth)
    out = transformer(x0, ops["vecs_all"], ops["b1_all"], ops["wqkv_all"],
                      ops["wo_all"], ops["w1_all"], ops["w2_all"],
                      n1=n1, heads=heads, dim_head=dim_head)
    embedding = out[:, :n1, :]                       # drop pad rows (glue)

    # Pooling (glue) + Kernel 3: mlp_head
    pooled = jnp.mean(embedding, axis=1) if pool == "mean" else embedding[:, 0]
    logits = mlp_head(pooled, ops["head_gb"], ops["head_w_t"],
                      ops["head_b_p"], ops["num_classes"])
    return logits, embedding


if __name__ == "__main__":
    cfg = dict(image_size=16, patch_size=4, channels=3, dim=32, depth=2,
               heads=4, dim_head=8, mlp_dim=64, num_classes=10)
    key = jax.random.PRNGKey(0)
    pkey, xkey = jax.random.split(key)
    params = init_vit_params(pkey, **cfg)
    ops = prepare_operands(params, image_size=cfg["image_size"],
                           patch_size=cfg["patch_size"],
                           channels=cfg["channels"],
                           heads=cfg["heads"], dim_head=cfg["dim_head"])

    img = jax.random.normal(
        xkey, (2, cfg["channels"], cfg["image_size"], cfg["image_size"]),
        dtype=jnp.float32)

    logits, embedding = vit_forward(
        ops, img, patch_size=cfg["patch_size"],
        heads=cfg["heads"], dim_head=cfg["dim_head"], pool="cls")
    jax.block_until_ready((logits, embedding))

    num_patches = (cfg["image_size"] // cfg["patch_size"]) ** 2
    assert logits.shape == (2, cfg["num_classes"])
    assert embedding.shape == (2, num_patches + 1, cfg["dim"])
    assert bool(jnp.all(jnp.isfinite(logits))) and bool(jnp.all(jnp.isfinite(embedding)))
    print("KERNEL_OK")
</pallas_src>

<mosaic_0001>
module attributes {stable_mosaic.version = 11 : i64} {
  func.func @_embed_kernel(%arg0: i32, %arg1: memref<1x24x48xbf16, #tpu.memory_space<vmem>>, %arg2: memref<48x32xbf16, #tpu.memory_space<vmem>>, %arg3: memref<24x32xf32, #tpu.memory_space<vmem>>, %arg4: memref<1x24x32xf32, #tpu.memory_space<vmem>>) attributes {dimension_semantics = [#tpu.dimension_semantics<parallel>], iteration_bounds = array<i64: 2>, scalar_prefetch = 0 : i64, scratch_operands = 0 : i64, tpu.core_type = #tpu.core_type<tc>, window_params = [{transform_indices = @transform_0, window_bounds = array<i64: 1, 24, 48>}, {pipeline_mode = #tpu.pipeline_mode<synchronous>, transform_indices = @transform_1, window_bounds = array<i64: 48, 32>}, {pipeline_mode = #tpu.pipeline_mode<synchronous>, transform_indices = @transform_2, window_bounds = array<i64: 24, 32>}, {transform_indices = @transform_3, window_bounds = array<i64: 1, 24, 32>}]} {
    %c0 = arith.constant 0 : index
    %c0_0 = arith.constant 0 : index
    %c0_1 = arith.constant 0 : index
    %0 = vector.load %arg1[%c0, %c0_0, %c0_1] : memref<1x24x48xbf16, #tpu.memory_space<vmem>>, vector<1x24x48xbf16>
    %1 = vector.shape_cast %0 : vector<1x24x48xbf16> to vector<24x48xbf16>
    %c0_2 = arith.constant 0 : index
    %c0_3 = arith.constant 0 : index
    %2 = vector.load %arg2[%c0_2, %c0_3] : memref<48x32xbf16, #tpu.memory_space<vmem>>, vector<48x32xbf16>
    %cst = arith.constant dense<0.000000e+00> : vector<24x32xf32>
    %3 = tpu.matmul %1, %2, %cst {dimension_numbers = #tpu.dot_dimension_numbers<[1], [0], [0], [1], [0, 0, 1, 1], [], []>} : vector<24x48xbf16>, vector<48x32xbf16>, vector<24x32xf32> -> vector<24x32xf32>
    %c0_4 = arith.constant 0 : index
    %c0_5 = arith.constant 0 : index
    %4 = vector.load %arg3[%c0_4, %c0_5] : memref<24x32xf32, #tpu.memory_space<vmem>>, vector<24x32xf32>
    %5 = arith.addf %3, %4 : vector<24x32xf32>
    %c0_6 = arith.constant 0 : index
    %c0_7 = arith.constant 0 : index
    %c0_8 = arith.constant 0 : index
    %6 = vector.load %arg4[%c0_6, %c0_7, %c0_8] : memref<1x24x32xf32, #tpu.memory_space<vmem>>, vector<1x24x32xf32>
    %7 = vector.shape_cast %6 : vector<1x24x32xf32> to vector<24x32xf32>
    %8 = vector.shape_cast %5 : vector<24x32xf32> to vector<1x24x32xf32>
    tpu.vector_store %arg4[%c0_6, %c0_7, %c0_8], %8 {strides = array<i32>} : memref<1x24x32xf32, #tpu.memory_space<vmem>>, vector<1x24x32xf32>,
    return
  }
  func.func @transform_0(%arg0: i32) -> (i32, i32, i32) {
    %c0_i32 = arith.constant 0 : i32
    %c0_i32_0 = arith.constant 0 : i32
    %c0_i32_1 = arith.constant 0 : i32
    return %arg0, %c0_i32, %c0_i32_0 : i32, i32, i32
  }
  func.func @transform_1(%arg0: i32) -> (i32, i32) {
    %c0_i32 = arith.constant 0 : i32
    %c0_i32_0 = arith.constant 0 : i32
    %c0_i32_1 = arith.constant 0 : i32
    return %c0_i32, %c0_i32_0 : i32, i32
  }
  func.func @transform_2(%arg0: i32) -> (i32, i32) {
    %c0_i32 = arith.constant 0 : i32
    %c0_i32_0 = arith.constant 0 : i32
    %c0_i32_1 = arith.constant 0 : i32
    return %c0_i32, %c0_i32_0 : i32, i32
  }
  func.func @transform_3(%arg0: i32) -> (i32, i32, i32) {
    %c0_i32 = arith.constant 0 : i32
    %c0_i32_0 = arith.constant 0 : i32
    %c0_i32_1 = arith.constant 0 : i32
    return %arg0, %c0_i32, %c0_i32_0 : i32, i32, i32
  }
}

</mosaic_0001>

<bundles_post_ra>
// kernel: tpu_custom_call.1
= control target key start
LH: loop header
LB: loop body
LE: loop exit
PB: predicated region body
PF: predicated region fallthrough
CT: control target
= control target key end

     0   :  { %8 = vsyncpa [#allocation3], 0  ;;  %s733_s0 = inlined_call_operand.vmem [shape: bf16[2,24,48], index: 0, kind: input, shape index: {}]   ;;  %s734_s1 = inlined_call_operand.vmem [shape: bf16[48,32], index: 1, kind: input, shape index: {}]   ;;  %s735_s2 = inlined_call_operand.hbm [shape: f32[24,32], index: 2, kind: input, shape index: {}]   ;;  %s736_s3 = inlined_call_operand.hbm [shape: f32[2,24,32], index: 3, kind: output, shape index: {}]  }
   0x1   :  { %9 = vsyncpa [#allocation4], 0 }
   0x2   :  { %11 = vsyncpa [#allocation4 + $0x1], 0  ;;  %s586_s12 = smov 0   ;;  %s588_s13 = smov 0  }
   0x3   :  { %s590_s14 = smov 0   ;;  %s592_s15 = smov 0  }
   0x4 LB: > { %s607_s16 = sadd.s32 4294967295, %s558_s15   ;;  %s370_s17 = sadd.s32 4294967294, %s558_s15   ;;  %s558_s15 = sphi %s592_s15, %s752_s15   ;;  %s554_s14 = sphi %s590_s14, %s751_s14   ;;  %s550_s13 = sphi %s588_s13, %s750_s13   ;;  %s546_s12 = sphi %s586_s12, %s749_s12  }
   0x5   : > { %s611_s18 = sadd.s32 1, %s558_s15   ;;  %s92_s19 = sadd.s32 1, %s554_s14 }
   0x6   : > { %s89_s20 = ssub.s32 %s558_s15, %s611_s18  ;;  %p102_p0 = scmp.ne.s32.totalorder %s554_s14, %s550_s13 }
   0x7   : > { %p90_p1 = scmp.eq.s32.totalorder %s89_s20, 0  ;;  %p103_p2 = scmp.eq.s32.totalorder %s607_s16, 1 }
   0x8   : > { %p108_p3 = scmp.ne.s32.totalorder %s550_s13, %s546_s12  ;;  %p109_p4 = scmp.eq.s32.totalorder %s370_s17, 1 }
   0x9   : > { %s622_s21 = scalar_select %p90_p1, %s554_s14, %s92_s19  }
   0xa   : > { %p624_p5 = por %p103_p2, %p102_p0  ;;  %p628_p6 = por %p109_p4, %p108_p3 }
   0xb   : > { %p371_p7 = scmp.ge.s32.totalorder %s558_s15, 1  ;;  %p116_p8 = scmp.lt.s32.totalorder %s558_s15, 3 }
   0xc   : > { %s740_s22 = scalar_select %p624_p5, 1, 0 }
   0xd   : > { %s741_s23 = scalar_select %p628_p6, 1, 0 }
   0xe   : > { %p737_p9 = scmp.eq.s32.totalorder %s607_s16, 0  ;;  %p635_p10 = pnand %p371_p7, %p116_p8 }
   0xf   : > { %s560_s25 = smov [#allocation2]   ;;  %s464_s30 = scalar_lea.hbm %s735_s2, 384 }
  0x10   : > { %s742_s24 = scalar_select %p635_p10, 1, 0 }
  0x11   : > { %s131_s26 = sshll.u32 %s560_s25, 4  ;;  %p411_p11 = pneg %p635_p10  ;;  %s132_s26 = int_to_ptr.vmem [resolvable:$true] %s131_s26 }
  0x12   : > { %p465_p13 = scmp.ne.s32.totalorder %s735_s2, %s464_s30  ;;  %p471_p3 = scmp.lt.u32.totalorder %s464_s30, %s735_s2 }
  0x13   : > { %p643_p12 = pnand %p737_p9, %p411_p11 }
  0x15   : > { %p466_p0 = pneg %p643_p12 }
  0x17   : > { %p467_p1 = pnand %p466_p0, %p465_p13 }
  0x19   : > { %p468_p2 = pneg %p467_p1 }
  0x1b   : > { %p473_p4 = pnand %p471_p3, %p468_p2 }
  0x1d   : > { %476 = shalt.err (!%p473_p4)
}
  0x1e   : > { %s477_s8 = scalar_lea.vmem %s132_s26, 384  ;;  %p485_p9 = scmp.lt.s32.totalorder %s132_s26, %s132_s26 }
  0x1f   : > { %p478_p7 = scmp.ne.s32.totalorder %s132_s26, %s477_s8  ;;  %p486_p6 = scmp.lt.s32.totalorder %s477_s8, %s477_s8 }
  0x21   : > { %p480_p8 = pnand %p478_p7, %p466_p0  ;;  %p487_p5 = por %p486_p6, %p485_p9 }
  0x23   : > { %p481_p11 = pneg %p480_p8 }
  0x25   : > { %p488_p10 = pnand %p487_p5, %p481_p11 }
  0x27   : > { %491 = shalt.err (!%p488_p10)
}
  0x28   : > { %s561_s9 = smov 128   ;;  %s562_s10 = smov 8  }
  0x29   : > { %414 = dma.hbm_to_vmem [thread:$0]  (!%p643_p12), %s735_s2, 384, %s132_s26, [#allocation3], %s561_s9, %s561_s9, %s562_s10  }
  0x2a   : > { %p744_p13 = scmp.ne.s32.totalorder %s742_s24, 0 }
  0x2b   : > { %p745_p1 = scmp.eq.s32.totalorder (!%p744_p13), %s607_s16, 0 }
  0x2c   : > { %155 = sbr.rel (%p744_p13) target bundleno = 297 (0x129), region = 32 }
  0x33   : > { %537 = dma.done.wait (%p745_p1), [#allocation3], 384   ;;  %p746_p0 = pmov %p745_p1 }
  0x34   : > { %p179_p5 = scmp.lt.s32.totalorder %s607_s16, 1  ;;  %v459_v0 = vld [vmem:[%s734_s1] sm:$0xff]   ;;  %v460_v1 = vld [vmem:[%s734_s1 + $0x8] sm:$0xff]   ;;  %vm223_vm0 = vcmask 392192   ;;  %v461_v2 = vld [vmem:[%s734_s1 + $0x10] sm:$0xff]   ;;  %s176_s6 = sand.u32 1, %s550_s13  }
  0x35   : > { %539 = vsyncadd (%p746_p0), [#allocation3], 4294966912  ;;  %392 = vmatprep.subr.bf16.mxu0 %v459_v0  ;;  %s402_s7 = smul.u32 24, %s176_s6  ;;  %v196_v5 = vld [vmem:[#allocation2 + $0x10] sm:$0xff]  ;;  %v194_v6 = vld [vmem:[#allocation2] sm:$0xff]  ;;  %vm278_vm1 = vcmask 261120  }
  0x36   : > { %s180_s19 = scalar_select %p179_p5, %s607_s16, 1  ;;  %393 = vmatpush3.bf16.msra.mxu0 %v459_v0  ;;  %v195_v10 = vld [vmem:[#allocation2 + $0x8] sm:$0xff] }
  0x37   : > { %394 = vmatprep.subr.bf16.mxu0 %v460_v1  ;;  %s404_s8 = smul.u32 384, %s607_s16  ;;  %s178_s9 = scalar_lea.vmem [#allocation5], %s402_s7 }
  0x38   : > { %s403_s20 = smul.u32 12, %s180_s19  ;;  %s296_s10 = sshll.u32 %s178_s9, 4  ;;  %s685_s10 = int_to_ptr.vmem [resolvable:$true] %s296_s10 }
  0x39   : > { %s690_s16 = scalar_lea.hbm %s736_s3, %s404_s8  ;;  %s692_s19 = scalar_lea.sflag [#allocation4], %s176_s6 }
  0x3a   : > { %s183_s30 = scalar_lea.vmem %s733_s0, %s403_s20  ;;  %395 = vmatpush3.bf16.msra.mxu0 %v460_v1  ;;  %s492_s20 = scalar_lea.vmem %s685_s10, 384 }
  0x3b   : > { %v462_v3 = vld [vmem:[%s183_s30] sm:$0xff]   ;;  %396 = vmatprep.subr.bf16.mxu0 %v461_v2  ;;  %v463_v4 = vld [vmem:[%s183_s30 + $0x8] ss:$0 sps:$4 sm:$0xff]   ;;  %p493_p6 = scmp.ne.s32.totalorder %s685_s10, %s492_s20  ;;  %p747_p9 = scmp.ne.s32.totalorder %s740_s22, 0 }
  0x3c   : > { %398 = vmatprep.mubr.msk.bf16.mxu0 %vm223_vm0, %v462_v3  ;;  %s563_s25 = smov [#allocation5]  }
  0x3d   : > { %p494_p10 = pnand %p493_p6, %p747_p9  ;;  %s496_s27 = sshll.u32 %s563_s25, 4  ;;  %s497_s27 = int_to_ptr.vmem [resolvable:$false] %s496_s27 }
  0x3e   : > { %397 = vmatpush3.bf16.msra.mxu0 %v461_v2  ;;  %s498_s26 = scalar_lea.vmem %s497_s27, 768  ;;  %p499_p2 = scmp.lt.s32.totalorder %s685_s10, %s497_s27 }
  0x3f   : > { %p495_p12 = pneg %p494_p10  ;;  %p500_p3 = scmp.lt.s32.totalorder %s498_s26, %s492_s20 }
  0x41   : > { %399 = vmatmul.mubr.msk.bf16.vlgmr.msra.gmra.mrb[0].mxu0 %vm223_vm0, %v463_v4  ;;  %p501_p4 = por %p500_p3, %p499_p2 }
  0x43   : > { %p502_p7 = pnand %p501_p4, %p495_p12 }
 0x114   : > { %v400_v7 = vpop.f32.mrb[0].mxu0 }
 0x115   : > { %v273_v8 = vadd.f32 %v400_v7, %v196_v5  ;;  %v264_v9 = vpop.f32.mrb[1].mxu0 }
 0x116   : > { %v265_v11 = vadd.f32 %v264_v9, %v194_v6  ;;  %v401_v12 = vpop.f32.mrb[2].mxu0 }
 0x117   : > { %281 = vst.msk [vmem:[%s178_s9 + $0x10] sm:$0xff] %vm278_vm1, %v273_v8  ;;  %v267_v13 = vpop.f32.mrb[3].mxu0 }
 0x118   : > { %279 = vst.msk [vmem:[%s178_s9] sm:$0xff] %vm278_vm1, %v265_v11  ;;  %v268_v14 = vadd.f32 %v267_v13, %v195_v10 }
 0x11a   : > { %280 = vst.msk [vmem:[%s178_s9 + $0x8] sm:$0xff] %vm278_vm1, %v268_v14 }
 0x11b   : > { %505 = shalt.err (!%p502_p7)
}
 0x11c   : > { %s506_s28 = scalar_lea.hbm %s690_s16, 384  ;;  %s510_s30 = scalar_lea.hbm %s736_s3, 768 }
 0x11d   : > { %p507_p8 = scmp.ne.s32.totalorder %s690_s16, %s506_s28  ;;  %p511_p1 = scmp.lt.u32.totalorder %s690_s16, %s736_s3 }
 0x11e   : > { %p512_p0 = scmp.lt.u32.totalorder %s510_s30, %s506_s28  ;;  %p514_p6 = scmp.lt.u32.totalorder %s506_s28, %s690_s16 }
 0x11f   : > { %p508_p11 = pnand %p507_p8, %p747_p9 }
 0x120   : > { %p513_p5 = por %p512_p0, %p511_p1 }
 0x121   : > { %p509_p13 = pneg %p508_p11 }
 0x122   : > { %p515_p10 = por %p514_p6, %p513_p5 }
 0x124   : > { %p516_p12 = pnand %p515_p10, %p509_p13 }
 0x126   : > { %519 = shalt.err (!%p516_p12)
}
 0x127   : > { %s564_s6 = smov 128   ;;  %s565_s7 = smov 8  }
 0x128   : > { %409 = dma.vmem_to_hbm [thread:$0]  (%p747_p9), %s685_s10, 384, %s690_s16, %s692_s19, %s564_s6, %s564_s6, %s565_s7  }
 0x129 PF: > { %p421_p2 = scmp.ge.s32.totalorder %s558_s15, 2  ;;  %s311_s8 = sand.u32 1, %s546_s12  }
 0x12a   : > { %p748_p3 = scmp.ne.s32.totalorder %s741_s23, 0  ;;  %s312_s9 = scalar_lea.sflag [#allocation4], %s311_s8 }
 0x12c   : > { %p416_p4 = pnand %p421_p2, %p748_p3 }
 0x12e   : > { %541 = dma.done.wait (!%p416_p4), %s312_s9, 384  }
 0x12f   : > { %543 = vsyncadd (!%p416_p4), %s312_s9, 4294966912  ;;  %p14_p7 = scmp.ge.s32.totalorder %s611_s18, 4   ;;  %s749_s12 = smov %s550_s13 }
 0x130   : > { %s750_s13 = smov %s554_s14  ;;  %s751_s14 = smov %s622_s21 }
 0x131   : > { %s752_s15 = smov %s611_s18  ;;  %16 = sbr.rel (!%p14_p7) target bundleno = 4 (0x4), region = 72 }
 0x138   :  { %317 = vsyncpa [#allocation3], 1 }
 0x139   :  { %319 = vsyncpa [#allocation3 + $0x1], 1 }
 0x13a   :  { %320 = vsyncpa [#allocation4], 1 }
 0x13b   :  { %322 = vsyncpa [#allocation4 + $0x1], 1 }

</bundles_post_ra>
